<compile_context>
chip_gen: v6e
topology: v6e:2x2x1
jax: 0.10.0
libtpu: 0.0.40
codegen_flags: <defaults>
</compile_context>

<pallas_src>
import math
import functools

import jax
import jax.numpy as jnp
from jax import lax
from jax.experimental import pallas as pl
from jax.experimental.pallas import tpu as pltpu

_SUB = 8          # f32 sublane tile
_MAX_TB = 1024    # max batch rows per grid step


def _round_up(x: int, m: int) -> int:
    return ((x + m - 1) // m) * m


def _cdiv(a: int, b: int) -> int:
    return (a + b - 1) // b


def _pad_to(a, shape):
    """Zero-pad `a` up to `shape` (zero padding keeps matmul/ReLU exact)."""
    pads = [(0, s - d) for d, s in zip(a.shape, shape)]
    if all(p == (0, 0) for p in pads):
        return a
    return jnp.pad(a, pads)


def _pick_batch_tile(B: int) -> int:
    """Batch tile: big (amortize per-step overhead), small padding waste,
    and >=2 (even) grid steps for large batches so both v7x cores get work."""
    if B <= 64:
        return B                              # single tile (== full dim, legal)
    n_tiles = max(2, _cdiv(B, _MAX_TB))
    if n_tiles % 2:
        n_tiles += 1                          # even #tiles -> balanced megacore split
    return _round_up(_cdiv(B, n_tiles), _SUB)


def _make_mlp_kernel(n_hidden_layers: int):
    """Fused MLP: relu(fc1) -> [relu(hidden_l)]*L -> fc3, in a single kernel."""

    def _dot(a, w):
        # Cast activations to the weight dtype only when they differ (bf16 path);
        # always accumulate in f32 on the MXU.
        if a.dtype != w.dtype:
            a = a.astype(w.dtype)
        return jnp.dot(a, w, preferred_element_type=jnp.float32)

    if n_hidden_layers == 0:
        def kernel0(x_ref, w1_ref, b1_ref, w3_ref, b3_ref, o_ref):
            h = jnp.maximum(_dot(x_ref[...], w1_ref[...]) + b1_ref[...], 0.0)
            o_ref[...] = (_dot(h, w3_ref[...]) + b3_ref[...]).astype(o_ref.dtype)
        return kernel0

    def kernel(x_ref, w1_ref, b1_ref, wh_ref, bh_ref, w3_ref, b3_ref, o_ref):
        h = jnp.maximum(_dot(x_ref[...], w1_ref[...]) + b1_ref[...], 0.0)

        def body(l, h):
            return jnp.maximum(_dot(h, wh_ref[l]) + bh_ref[l], 0.0)

        h = lax.fori_loop(0, n_hidden_layers, body, h, unroll=True)
        o_ref[...] = (_dot(h, w3_ref[...]) + b3_ref[...]).astype(o_ref.dtype)

    return kernel


def prepare_bare_diffusion_params(params, n_hidden_layers: int,
                                  weights_dtype=None, lane_align=None):
    """One-time weight prep: lane-dense padding of the hidden dim, stacking of
    hidden layers into [L,H,H]/[L,1,H], optional bf16 cast of weights.

    Run once per model; the forward never repacks weights (perf feedback #1).
    """
    in_dim, hidden_dim = params["w1"].shape
    out_dim = params["w3"].shape[1]
    if lane_align is None:
        # v6e/v7x MXU is 256 wide -> 256-align big hidden dims; 128 otherwise
        # (also keep 128 on v5e by passing lane_align=128 explicitly).
        lane_align = 256 if hidden_dim >= 256 else 128
    h_pad = _round_up(hidden_dim, lane_align)

    wcast = (lambda w: w.astype(weights_dtype)) if weights_dtype is not None else (lambda w: w)

    prepared = {
        # in/out feature dims stay logical (24 here): no x pad / output slice needed.
        "w1": wcast(_pad_to(params["w1"], (in_dim, h_pad))),
        "b1": _pad_to(params["b1"], (1, h_pad)),
        "w3": wcast(_pad_to(params["w3"], (h_pad, out_dim))),
        "b3": params["b3"],
    }
    if n_hidden_layers > 0:
        wh = jnp.stack([_pad_to(w, (h_pad, h_pad)) for w in params["wh"]])
        bh = jnp.stack([_pad_to(b, (1, h_pad)) for b in params["bh"]])
        prepared["wh"] = wcast(wh)
        prepared["bh"] = bh
    # Materialize on device once.
    return jax.tree_util.tree_map(jnp.asarray, prepared)


@functools.partial(jax.jit, static_argnames=("n_hidden_layers",))
def bare_diffusion_forward(x, prepared, *, n_hidden_layers: int):
    """Fused BareDiffusion forward: x [B, N*3] -> [B, N*3].

    `prepared` comes from prepare_bare_diffusion_params. (The PyTorch module
    also takes `t`, which BareDiffusion.forward ignores.)
    """
    B, in_dim = x.shape
    h_pad = prepared["w1"].shape[1]
    out_dim = prepared["w3"].shape[1]
    L = n_hidden_layers

    tb = _pick_batch_tile(B)
    grid = (_cdiv(B, tb),)                      # ragged last tile is fine: rows are
                                                # independent, OOB rows masked on store.

    # Constant-index blocks (weights/biases): single-buffered, VMEM-resident.
    def const_spec(shape, imap):
        return pl.BlockSpec(shape, imap, pipeline_mode=pl.Buffered(1))

    in_specs = [
        pl.BlockSpec((tb, in_dim), lambda i: (i, 0)),          # x: batch-tiled
        const_spec((in_dim, h_pad), lambda i: (0, 0)),         # w1
        const_spec((1, h_pad), lambda i: (0, 0)),              # b1
    ]
    operands = [x, prepared["w1"], prepared["b1"]]
    if L > 0:
        in_specs += [
            const_spec((L, h_pad, h_pad), lambda i: (0, 0, 0)),  # stacked hidden W
            const_spec((L, 1, h_pad), lambda i: (0, 0, 0)),      # stacked hidden b
        ]
        operands += [prepared["wh"], prepared["bh"]]
    in_specs += [
        const_spec((h_pad, out_dim), lambda i: (0, 0)),        # w3
        const_spec((1, out_dim), lambda i: (0, 0)),            # b3
    ]
    operands += [prepared["w3"], prepared["b3"]]

    # Raise the scoped VMEM limit only when the footprint demands it
    # (headroom below v7x's 64 MiB physical VMEM).
    w_bytes = prepared["w1"].dtype.itemsize
    est = (in_dim * h_pad + L * h_pad * h_pad + h_pad * out_dim) * w_bytes   # weights (1 buf)
    est += (2 * h_pad + out_dim + L * h_pad) * 4                             # biases
    est += 2 * tb * (in_dim + out_dim) * 4                                   # x/out double-buffered
    est += 2 * tb * h_pad * 4                                                # live activations
    vmem_limit = None
    if est > 24 * 1024 * 1024:
        vmem_limit = min(int(est * 1.5), 56 * 1024 * 1024)

    return pl.pallas_call(
        _make_mlp_kernel(L),
        out_shape=jax.ShapeDtypeStruct((B, out_dim), jnp.float32),
        grid=grid,
        in_specs=in_specs,
        out_specs=pl.BlockSpec((tb, out_dim), lambda i: (i, 0)),
        compiler_params=pltpu.CompilerParams(
            dimension_semantics=("parallel",),   # shard batch tiles across TCs
            vmem_limit_bytes=vmem_limit,
        ),
    )(*operands)


def init_bare_diffusion_params(key, N: int, n_hidden_layers: int, hidden_dim: int):
    """Deterministic init matching nn.Linear's U(-1/sqrt(fan_in), 1/sqrt(fan_in)).
    Weights stored as [in, out] (transpose of torch's [out, in]); biases [1, out]."""
    in_dim = N * 3

    def linear(key, fan_in, fan_out):
        kw, kb = jax.random.split(key)
        bound = 1.0 / math.sqrt(fan_in)
        w = jax.random.uniform(kw, (fan_in, fan_out), jnp.float32, -bound, bound)
        b = jax.random.uniform(kb, (1, fan_out), jnp.float32, -bound, bound)
        return w, b

    keys = jax.random.split(key, 2 + n_hidden_layers)
    w1, b1 = linear(keys[0], in_dim, hidden_dim)
    wh, bh = [], []
    for i in range(n_hidden_layers):
        w, b = linear(keys[1 + i], hidden_dim, hidden_dim)
        wh.append(w)
        bh.append(b)
    w3, b3 = linear(keys[1 + n_hidden_layers], hidden_dim, in_dim)
    return {"w1": w1, "b1": b1, "wh": wh, "bh": bh, "w3": w3, "b3": b3}


def reference_forward(x, params, n_hidden_layers):
    h = jnp.maximum(x @ params["w1"] + params["b1"], 0.0)
    for i in range(n_hidden_layers):
        h = jnp.maximum(h @ params["wh"][i] + params["bh"][i], 0.0)
    return h @ params["w3"] + params["b3"]


if __name__ == "__main__":
    # Small shapes consistent with the module: N=8 -> feature dim N*3 = 24,
    # hidden_dim=32, one hidden layer (module default), batch=2.
    N = 8
    n_hidden_layers = 1
    hidden_dim = 32
    batch = 2

    key = jax.random.PRNGKey(0)
    k_param, k_x, k_x2 = jax.random.split(key, 3)
    params = init_bare_diffusion_params(k_param, N, n_hidden_layers, hidden_dim)

    # One-time weight prep (padding/stacking hoisted out of the forward).
    prepared = prepare_bare_diffusion_params(params, n_hidden_layers)

    x = jax.random.normal(k_x, (batch, N * 3), jnp.float32)
    t = jnp.zeros((batch,), jnp.int32)   # unused by BareDiffusion.forward (interface parity)

    out = jax.block_until_ready(
        bare_diffusion_forward(x, prepared, n_hidden_layers=n_hidden_layers))
    ref = reference_forward(x, params, n_hidden_layers)
    assert out.shape == (batch, N * 3)
    assert jnp.allclose(out, ref, atol=1e-4, rtol=1e-4)

    # Larger batch: 2 grid steps (tb=304) with a ragged last tile -> exercises the
    # cdiv grid, the parallel batch axis, and VMEM-resident weights across steps.
    big_batch = 600
    x_big = jax.random.normal(k_x2, (big_batch, N * 3), jnp.float32)
    out_big = jax.block_until_ready(
        bare_diffusion_forward(x_big, prepared, n_hidden_layers=n_hidden_layers))
    ref_big = reference_forward(x_big, params, n_hidden_layers)
    assert out_big.shape == (big_batch, N * 3)
    assert jnp.allclose(out_big, ref_big, atol=1e-4, rtol=1e-4)

    # bf16-weight path (recommended default for v6e/v7x deployment): halves weight
    # DMA/VMEM, keeps f32 biases + f32 MXU accumulation; looser tolerance expected.
    prepared_bf16 = prepare_bare_diffusion_params(
        params, n_hidden_layers, weights_dtype=jnp.bfloat16)
    out_bf16 = jax.block_until_ready(
        bare_diffusion_forward(x, prepared_bf16, n_hidden_layers=n_hidden_layers))
    assert jnp.allclose(out_bf16, ref, atol=5e-2, rtol=5e-2)

    print("KERNEL_OK")
</pallas_src>

<mosaic_0001>
module attributes {stable_mosaic.version = 11 : i64} {
  func.func @kernel(%arg0: i32, %arg1: memref<2x24xf32, #tpu.memory_space<vmem>>, %arg2: memref<24x128xf32, #tpu.memory_space<vmem>>, %arg3: memref<1x128xf32, #tpu.memory_space<vmem>>, %arg4: memref<1x128x128xf32, #tpu.memory_space<vmem>>, %arg5: memref<1x1x128xf32, #tpu.memory_space<vmem>>, %arg6: memref<128x24xf32, #tpu.memory_space<vmem>>, %arg7: memref<1x24xf32, #tpu.memory_space<vmem>>, %arg8: memref<2x24xf32, #tpu.memory_space<vmem>>) attributes {dimension_semantics = [#tpu.dimension_semantics<parallel>], iteration_bounds = array<i64: 1>, scalar_prefetch = 0 : i64, scratch_operands = 0 : i64, tpu.core_type = #tpu.core_type<tc>, window_params = [{transform_indices = @transform_0, window_bounds = array<i64: 2, 24>}, {pipeline_mode = #tpu.pipeline_mode<synchronous>, transform_indices = @transform_1, window_bounds = array<i64: 24, 128>}, {pipeline_mode = #tpu.pipeline_mode<synchronous>, transform_indices = @transform_2, window_bounds = array<i64: 1, 128>}, {pipeline_mode = #tpu.pipeline_mode<synchronous>, transform_indices = @transform_3, window_bounds = array<i64: 1, 128, 128>}, {pipeline_mode = #tpu.pipeline_mode<synchronous>, transform_indices = @transform_4, window_bounds = array<i64: 1, 1, 128>}, {pipeline_mode = #tpu.pipeline_mode<synchronous>, transform_indices = @transform_5, window_bounds = array<i64: 128, 24>}, {pipeline_mode = #tpu.pipeline_mode<synchronous>, transform_indices = @transform_6, window_bounds = array<i64: 1, 24>}, {transform_indices = @transform_7, window_bounds = array<i64: 2, 24>}]} {
    %c0 = arith.constant 0 : index
    %c0_0 = arith.constant 0 : index
    %0 = vector.load %arg1[%c0, %c0_0] : memref<2x24xf32, #tpu.memory_space<vmem>>, vector<2x24xf32>
    %c0_1 = arith.constant 0 : index
    %c0_2 = arith.constant 0 : index
    %1 = vector.load %arg2[%c0_1, %c0_2] : memref<24x128xf32, #tpu.memory_space<vmem>>, vector<24x128xf32>
    %cst = arith.constant dense<0.000000e+00> : vector<2x128xf32>
    %2 = tpu.matmul %0, %1, %cst {dimension_numbers = #tpu.dot_dimension_numbers<[1], [0], [0], [1], [0, 0, 1, 1], [], []>} : vector<2x24xf32>, vector<24x128xf32>, vector<2x128xf32> -> vector<2x128xf32>
    %c0_3 = arith.constant 0 : index
    %c0_4 = arith.constant 0 : index
    %3 = vector.load %arg3[%c0_3, %c0_4] : memref<1x128xf32, #tpu.memory_space<vmem>>, vector<1x128xf32>
    %4 = vector.broadcast %3 : vector<1x128xf32> to vector<2x128xf32>
    %5 = arith.addf %2, %4 : vector<2x128xf32>
    %cst_5 = arith.constant 0.000000e+00 : f32
    %6 = vector.broadcast %cst_5 : f32 to vector<2x128xf32>
    %7 = arith.maximumf %5, %6 : vector<2x128xf32>
    %c0_i32 = arith.constant 0 : i32
    %8 = arith.index_cast %c0_i32 : i32 to index
    %c0_6 = arith.constant 0 : index
    %c0_7 = arith.constant 0 : index
    %9 = vector.load %arg4[%8, %c0_6, %c0_7] : memref<1x128x128xf32, #tpu.memory_space<vmem>>, vector<1x128x128xf32>
    %10 = vector.shape_cast %9 : vector<1x128x128xf32> to vector<128x128xf32>
    %cst_8 = arith.constant dense<0.000000e+00> : vector<2x128xf32>
    %11 = tpu.matmul %7, %10, %cst_8 {dimension_numbers = #tpu.dot_dimension_numbers<[1], [0], [0], [1], [0, 0, 1, 1], [], []>} : vector<2x128xf32>, vector<128x128xf32>, vector<2x128xf32> -> vector<2x128xf32>
    %12 = arith.index_cast %c0_i32 : i32 to index
    %c0_9 = arith.constant 0 : index
    %c0_10 = arith.constant 0 : index
    %13 = vector.load %arg5[%12, %c0_9, %c0_10] : memref<1x1x128xf32, #tpu.memory_space<vmem>>, vector<1x1x128xf32>
    %14 = vector.shape_cast %13 : vector<1x1x128xf32> to vector<1x128xf32>
    %15 = vector.broadcast %14 : vector<1x128xf32> to vector<2x128xf32>
    %16 = arith.addf %11, %15 : vector<2x128xf32>
    %cst_11 = arith.constant 0.000000e+00 : f32
    %17 = vector.broadcast %cst_11 : f32 to vector<2x128xf32>
    %18 = arith.maximumf %16, %17 : vector<2x128xf32>
    %c1_i32 = arith.constant 1 : i32
    %c0_12 = arith.constant 0 : index
    %c0_13 = arith.constant 0 : index
    %19 = vector.load %arg6[%c0_12, %c0_13] : memref<128x24xf32, #tpu.memory_space<vmem>>, vector<128x24xf32>
    %cst_14 = arith.constant dense<0.000000e+00> : vector<2x24xf32>
    %20 = tpu.matmul %18, %19, %cst_14 {dimension_numbers = #tpu.dot_dimension_numbers<[1], [0], [0], [1], [0, 0, 1, 1], [], []>} : vector<2x128xf32>, vector<128x24xf32>, vector<2x24xf32> -> vector<2x24xf32>
    %c0_15 = arith.constant 0 : index
    %c0_16 = arith.constant 0 : index
    %21 = vector.load %arg7[%c0_15, %c0_16] : memref<1x24xf32, #tpu.memory_space<vmem>>, vector<1x24xf32>
    %22 = vector.broadcast %21 : vector<1x24xf32> to vector<2x24xf32>
    %23 = arith.addf %20, %22 : vector<2x24xf32>
    %c0_17 = arith.constant 0 : index
    %c0_18 = arith.constant 0 : index
    %24 = vector.load %arg8[%c0_17, %c0_18] : memref<2x24xf32, #tpu.memory_space<vmem>>, vector<2x24xf32>
    tpu.vector_store %arg8[%c0_17, %c0_18], %23 {strides = array<i32>} : memref<2x24xf32, #tpu.memory_space<vmem>>, vector<2x24xf32>,
    return
  }
  func.func @transform_0(%arg0: i32) -> (i32, i32) {
    %c0_i32 = arith.constant 0 : i32
    %c0_i32_0 = arith.constant 0 : i32
    return %arg0, %c0_i32 : i32, i32
  }
  func.func @transform_1(%arg0: i32) -> (i32, i32) {
    %c0_i32 = arith.constant 0 : i32
    %c0_i32_0 = arith.constant 0 : i32
    %c0_i32_1 = arith.constant 0 : i32
    return %c0_i32, %c0_i32_0 : i32, i32
  }
  func.func @transform_2(%arg0: i32) -> (i32, i32) {
    %c0_i32 = arith.constant 0 : i32
    %c0_i32_0 = arith.constant 0 : i32
    %c0_i32_1 = arith.constant 0 : i32
    return %c0_i32, %c0_i32_0 : i32, i32
  }
  func.func @transform_3(%arg0: i32) -> (i32, i32, i32) {
    %c0_i32 = arith.constant 0 : i32
    %c0_i32_0 = arith.constant 0 : i32
    %c0_i32_1 = arith.constant 0 : i32
    %c0_i32_2 = arith.constant 0 : i32
    return %c0_i32, %c0_i32_0, %c0_i32_1 : i32, i32, i32
  }
  func.func @transform_4(%arg0: i32) -> (i32, i32, i32) {
    %c0_i32 = arith.constant 0 : i32
    %c0_i32_0 = arith.constant 0 : i32
    %c0_i32_1 = arith.constant 0 : i32
    %c0_i32_2 = arith.constant 0 : i32
    return %c0_i32, %c0_i32_0, %c0_i32_1 : i32, i32, i32
  }
  func.func @transform_5(%arg0: i32) -> (i32, i32) {
    %c0_i32 = arith.constant 0 : i32
    %c0_i32_0 = arith.constant 0 : i32
    %c0_i32_1 = arith.constant 0 : i32
    return %c0_i32, %c0_i32_0 : i32, i32
  }
  func.func @transform_6(%arg0: i32) -> (i32, i32) {
    %c0_i32 = arith.constant 0 : i32
    %c0_i32_0 = arith.constant 0 : i32
    %c0_i32_1 = arith.constant 0 : i32
    return %c0_i32, %c0_i32_0 : i32, i32
  }
  func.func @transform_7(%arg0: i32) -> (i32, i32) {
    %c0_i32 = arith.constant 0 : i32
    %c0_i32_0 = arith.constant 0 : i32
    return %arg0, %c0_i32 : i32, i32
  }
}

</mosaic_0001>

<bundles_post_ra>
// kernel: bare_diffusion_forward.1
= control target key start
LH: loop header
LB: loop body
LE: loop exit
PB: predicated region body
PF: predicated region fallthrough
CT: control target
= control target key end

     0   :  { %v462_v1 = vmov 0.0   ;;  %vm463_vm0 = vmmov 0   ;;  %vm38_vm1 = vcmask 195584   ;;  %s666_s0 = inlined_call_operand.vmem [shape: f32[2,24], index: 0, kind: input, shape index: {}]   ;;  %s667_s1 = inlined_call_operand.vmem [shape: f32[24,128], index: 1, kind: input, shape index: {}]   ;;  %s668_s2 = inlined_call_operand.vmem [shape: f32[1,128], index: 2, kind: input, shape index: {}]   ;;  %s669_s3 = inlined_call_operand.vmem [shape: f32[1,128,128], index: 3, kind: input, shape index: {}]   ;;  %s670_s4 = inlined_call_operand.vmem [shape: f32[1,1,128], index: 4, kind: input, shape index: {}]   ;;  %s671_s5 = inlined_call_operand.vmem [shape: f32[128,24], index: 5, kind: input, shape index: {}]   ;;  %s672_s6 = inlined_call_operand.vmem [shape: f32[1,24], index: 6, kind: input, shape index: {}]   ;;  %s673_s7 = inlined_call_operand.hbm [shape: f32[2,24], index: 7, kind: output, shape index: {}]  }
   0x1   :  { %v30_v0 = vld [vmem:[%s667_s1 + $0x10] sm:$0xff]  ;;  %358 = vmatprep.subr.mxu0 %v462_v1  ;;  %v29_v2 = vld [vmem:[%s667_s1 + $0x8] sm:$0xff]  ;;  %364 = vmatprep.mubr.msk.f32.mxu0 %vm463_vm0, %v462_v1  ;;  %v128_v3 = vld [vmem:[%s669_s3 + $0x78] sm:$0xff] }
   0x2   :  { %359 = vmatpush3.msra.mxu0 %v30_v0  ;;  %367 = vmatprep.subr.mxu1 %v462_v1  ;;  %v127_v4 = vld [vmem:[%s669_s3 + $0x70] sm:$0xff]  ;;  %v28_v5 = vld [vmem:[%s667_s1] sm:$0xff]  ;;  %v126_v7 = vld [vmem:[%s669_s3 + $0x68] sm:$0xff] }
   0x3   :  { %360 = vmatprep.subr.mxu0 %v462_v1  ;;  %368 = vmatpush3.msra.mxu1 %v128_v3  ;;  %v27_v6 = vld [vmem:[%s666_s0] sm:$0x3] }
   0x4   :  { %361 = vmatpush3.msra.mxu0 %v29_v2  ;;  %369 = vmatprep.subr.mxu1 %v462_v1  ;;  %v125_v8 = vld [vmem:[%s669_s3 + $0x60] sm:$0xff] }
   0x5   :  { %362 = vmatprep.subr.mxu0 %v462_v1  ;;  %370 = vmatpush3.msra.mxu1 %v127_v4 }
   0x6   :  { %363 = vmatpush3.msra.mxu0 %v28_v5  ;;  %371 = vmatprep.subr.mxu1 %v462_v1 }
   0x7   :  { %12 = vsyncpa [#allocation3], 0  ;;  %365 = vmatmul.mubr.msk.f32.vlgmr.msra.gmra.mxu0 %vm38_vm1, %v27_v6  ;;  %372 = vmatpush3.msra.mxu1 %v126_v7  ;;  %v124_v9 = vld [vmem:[%s669_s3 + $0x58] sm:$0xff]  ;;  %v123_v10 = vld [vmem:[%s669_s3 + $0x50] sm:$0xff]  ;;  %s464_s24 = smov [#allocation2]   ;;  %vm300_vm2 = vcmask 189440  }
   0x8   :  { %373 = vmatprep.subr.mxu1 %v462_v1  ;;  %399 = vmatprep.mubr.msk.f32.mxu1 %vm463_vm0, %v462_v1  ;;  %v122_v11 = vld [vmem:[%s669_s3 + $0x48] sm:$0xff]  ;;  %v121_v12 = vld [vmem:[%s669_s3 + $0x40] sm:$0xff]  ;;  %v120_v13 = vld [vmem:[%s669_s3 + $0x38] sm:$0xff]  ;;  %s308_s25 = sshll.u32 %s464_s24, 4  ;;  %s309_s25 = int_to_ptr.vmem [resolvable:$true] %s308_s25 }
   0x9   :  { %374 = vmatpush3.msra.mxu1 %v125_v8  ;;  %402 = vmatprep.subr.mxu0 %v462_v1  ;;  %v119_v14 = vld [vmem:[%s669_s3 + $0x30] sm:$0xff]  ;;  %v118_v15 = vld [vmem:[%s669_s3 + $0x28] sm:$0xff]  ;;  %v117_v16 = vld [vmem:[%s669_s3 + $0x20] sm:$0xff]  ;;  %p445_p1 = scmp.lt.s32.totalorder %s309_s25, %s309_s25 }
   0xa   :  { %375 = vmatprep.subr.mxu1 %v462_v1  ;;  %434 = vmatprep.mubr.msk.f32.mxu0 %vm463_vm0, %v462_v1  ;;  %v116_v17 = vld [vmem:[%s669_s3 + $0x18] sm:$0xff]  ;;  %v115_v18 = vld [vmem:[%s669_s3 + $0x10] sm:$0xff]  ;;  %v114_v19 = vld [vmem:[%s669_s3 + $0x8] sm:$0xff] }
   0xb   :  { %376 = vmatpush3.msra.mxu1 %v124_v9  ;;  %v113_v20 = vld [vmem:[%s669_s3] sm:$0xff]  ;;  %v222_v21 = vld [vmem:[%s671_s5 + $0x78] sm:$0xff]  ;;  %v221_v22 = vld [vmem:[%s671_s5 + $0x70] sm:$0xff] }
   0xc   :  { %377 = vmatprep.subr.mxu1 %v462_v1  ;;  %403 = vmatpush3.msra.mxu0 %v222_v21  ;;  %v220_v23 = vld [vmem:[%s671_s5 + $0x68] sm:$0xff]  ;;  %v219_v24 = vld [vmem:[%s671_s5 + $0x60] sm:$0xff]  ;;  %v218_v25 = vld [vmem:[%s671_s5 + $0x58] sm:$0xff] }
   0xd   :  { %378 = vmatpush3.msra.mxu1 %v123_v10  ;;  %404 = vmatprep.subr.mxu0 %v462_v1  ;;  %v217_v26 = vld [vmem:[%s671_s5 + $0x50] sm:$0xff]  ;;  %v216_v27 = vld [vmem:[%s671_s5 + $0x48] sm:$0xff]  ;;  %v215_v28 = vld [vmem:[%s671_s5 + $0x40] sm:$0xff] }
   0xe   :  { %379 = vmatprep.subr.mxu1 %v462_v1  ;;  %405 = vmatpush3.msra.mxu0 %v221_v22  ;;  %v214_v29 = vld [vmem:[%s671_s5 + $0x38] sm:$0xff]  ;;  %v213_v30 = vld [vmem:[%s671_s5 + $0x30] sm:$0xff]  ;;  %v212_v31 = vld [vmem:[%s671_s5 + $0x28] sm:$0xff] }
   0xf   :  { %380 = vmatpush3.msra.mxu1 %v122_v11  ;;  %406 = vmatprep.subr.mxu0 %v462_v1  ;;  %v211_v32 = vld [vmem:[%s671_s5 + $0x20] sm:$0xff]  ;;  %v210_v33 = vld [vmem:[%s671_s5 + $0x18] sm:$0xff]  ;;  %v209_v39 = vld [vmem:[%s671_s5 + $0x10] sm:$0xff] }
  0x10   :  { %381 = vmatprep.subr.mxu1 %v462_v1  ;;  %407 = vmatpush3.msra.mxu0 %v220_v23  ;;  %v316_v34 = vld [vmem:[%s668_s2] ss:$0 sm:$0xff]  ;;  %v208_v40 = vld [vmem:[%s671_s5 + $0x8] sm:$0xff] }
  0x11   :  { %382 = vmatpush3.msra.mxu1 %v121_v12  ;;  %408 = vmatprep.subr.mxu0 %v462_v1  ;;  %v207_v41 = vld [vmem:[%s671_s5] sm:$0xff]  ;;  %s440_s5 = scalar_lea.vmem %s309_s25, 32 }
  0x12   :  { %383 = vmatprep.subr.mxu1 %v462_v1  ;;  %409 = vmatpush3.msra.mxu0 %v219_v24  ;;  %v318_v42 = vld [vmem:[%s670_s4] ss:$0 sm:$0xff]  ;;  %p441_p0 = scmp.ne.s32.totalorder %s309_s25, %s440_s5  ;;  %p446_p2 = scmp.lt.s32.totalorder %s440_s5, %s440_s5 }
  0x13   :  { %384 = vmatpush3.msra.mxu1 %v120_v13  ;;  %410 = vmatprep.subr.mxu0 %v462_v1  ;;  %v319_v47 = vld [vmem:[%s672_s6] ss:$0 sm:$0xff] }
  0x14   :  { %385 = vmatprep.subr.mxu1 %v462_v1  ;;  %411 = vmatpush3.msra.mxu0 %v218_v25  ;;  %p447_p3 = por %p446_p2, %p445_p1 }
  0x15   :  { %386 = vmatpush3.msra.mxu1 %v119_v14  ;;  %412 = vmatprep.subr.mxu0 %v462_v1 }
  0x16   :  { %387 = vmatprep.subr.mxu1 %v462_v1  ;;  %413 = vmatpush3.msra.mxu0 %v217_v26  ;;  %p448_p4 = pnand %p447_p3, %p441_p0 }
  0x17   :  { %388 = vmatpush3.msra.mxu1 %v118_v15  ;;  %414 = vmatprep.subr.mxu0 %v462_v1 }
  0x18   :  { %389 = vmatprep.subr.mxu1 %v462_v1  ;;  %415 = vmatpush3.msra.mxu0 %v216_v27 }
  0x19   :  { %390 = vmatpush3.msra.mxu1 %v117_v16  ;;  %416 = vmatprep.subr.mxu0 %v462_v1 }
  0x1a   :  { %391 = vmatprep.subr.mxu1 %v462_v1  ;;  %417 = vmatpush3.msra.mxu0 %v215_v28 }
  0x1b   :  { %392 = vmatpush3.msra.mxu1 %v116_v17  ;;  %418 = vmatprep.subr.mxu0 %v462_v1 }
  0x1c   :  { %393 = vmatprep.subr.mxu1 %v462_v1  ;;  %419 = vmatpush3.msra.mxu0 %v214_v29 }
  0x1d   :  { %394 = vmatpush3.msra.mxu1 %v115_v18  ;;  %420 = vmatprep.subr.mxu0 %v462_v1 }
  0x1e   :  { %395 = vmatprep.subr.mxu1 %v462_v1  ;;  %421 = vmatpush3.msra.mxu0 %v213_v30 }
  0x1f   :  { %396 = vmatpush3.msra.mxu1 %v114_v19  ;;  %422 = vmatprep.subr.mxu0 %v462_v1 }
  0x20   :  { %397 = vmatprep.subr.mxu1 %v462_v1  ;;  %423 = vmatpush3.msra.mxu0 %v212_v31 }
  0x21   :  { %398 = vmatpush3.msra.mxu1 %v113_v20  ;;  %424 = vmatprep.subr.mxu0 %v462_v1 }
  0x22   :  { %425 = vmatpush3.msra.mxu0 %v211_v32 }
  0x23   :  { %426 = vmatprep.subr.mxu0 %v462_v1 }
  0x24   :  { %427 = vmatpush3.msra.mxu0 %v210_v33 }
  0x25   :  { %428 = vmatprep.subr.mxu0 %v462_v1 }
  0x26   :  { %429 = vmatpush3.msra.mxu0 %v209_v39 }
  0x27   :  { %430 = vmatprep.subr.mxu0 %v462_v1 }
  0x28   :  { %431 = vmatpush3.msra.mxu0 %v208_v40 }
  0x29   :  { %432 = vmatprep.subr.mxu0 %v462_v1 }
  0x2a   :  { %433 = vmatpush3.msra.mxu0 %v207_v41 }
  0xc7   :  { %v108_v35 = vpop.f32.mrf.mxu0 }
  0xc8   :  { %v109_v36 = vadd.f32 %v316_v34, %v108_v35 }
  0xc9   :  { %v366_v37 = vpop.f32.mrf.mxu0 }
  0xca   :  { %v112_v38 = vmax.f32 %v109_v36, 0.0 }
  0xcc   :  { %400 = vmatmul.mubr.f32.vlgmr.msra.gmra.mxu1 %v112_v38 }
 0x18c   :  { %v202_v43 = vpop.f32.mrf.mxu1 }
 0x18d   :  { %v203_v44 = vadd.f32 %v318_v42, %v202_v43 }
 0x18e   :  { %v401_v45 = vpop.f32.mrf.mxu1 }
 0x18f   :  { %v206_v46 = vmax.f32 %v203_v44, 0.0 }
 0x191   :  { %435 = vmatmul.mubr.f32.vlgmr.msra.gmra.mxu0 %v206_v46 }
 0x251   :  { %v296_v48 = vpop.f32.mrf.mxu0 }
 0x252   :  { %v297_v49 = vadd.f32 %v319_v47, %v296_v48 }
 0x253   :  { %v436_v50 = vpop.f32.mrf.mxu0 }
 0x254   :  { %301 = vst.msk [vmem:[#allocation2] sm:$0x3] %vm300_vm2, %v297_v49 }
 0x255   :  { %451 = shalt.err (!%p448_p4)
}
 0x256   :  { %311 = dma.vmem_to_hbm [thread:$0]  %s309_s25, 32, %s673_s7, [#allocation3]  }
 0x257   :  { %460 = dma.done.wait [#allocation3], 32  }
 0x258   :  { %461 = vsyncadd [#allocation3], 4294967264 }
 0x259   :  { %315 = vsyncpa [#allocation3], 1 }

</bundles_post_ra>
